<compile_context>
chip_gen: v5e
topology: v5e:2x2
jax: 0.10.0
libtpu: 0.0.40
codegen_flags: <defaults>
</compile_context>

<pallas_src>
import functools

import jax
import jax.numpy as jnp
from jax.experimental import pallas as pl
from jax.experimental.pallas import tpu as pltpu


def net_kernel(xt_ref, w1p_ref, b1p_ref, w2p_ref, thr_ref, out_ref, *, chunk):
    """One batch tile.

    xt_ref : (8, TB)  f32   packed inputs (two batch halves in the sublane dim)
    w1p_ref: (64, 8)  f32   block-diagonal packed layer-1 weight (W1^T twice)
    b1p_ref: (64, 1)  f32   packed layer-1 bias
    w2p_ref: (8, 64)  f32   folded layer-2 weight (rows 0/1 used, rest zero)
    thr_ref: (1, 1)   f32   decision threshold  (= b2[0] - b2[1])
    out_ref: (2, TB)  i32   action index per sample (row = batch half)
    """
    # Tiny constants: load once per grid step, stay in vregs across the loop.
    w1p = w1p_ref[...]
    b1p = b1p_ref[...]
    w2p = w2p_ref[...]
    thr = thr_ref[...]

    num_chunks = xt_ref.shape[1] // chunk

    @pl.loop(0, num_chunks)
    def _(c):
        off = pl.multiple_of(c * chunk, chunk)
        xc = xt_ref[:, pl.ds(off, chunk)]                                 # (8, C)
        # layer 1 (both halves at once) on the MXU
        h = jnp.dot(w1p, xc, preferred_element_type=jnp.float32) + b1p    # (64, C)
        h = jnp.maximum(h, 0.0)                                           # ReLU (VPU)
        # folded layer 2 + argmax: weighted reduction on the MXU, sign test on VPU
        s = jnp.dot(w2p, h, preferred_element_type=jnp.float32)           # (8, C)
        out_ref[:, pl.ds(off, chunk)] = (s[0:2, :] > thr).astype(jnp.int32)


@functools.partial(jax.jit, static_argnames=("block_half",))
def net_forward(x, w1, b1, w2, b2, *, block_half=16384):
    """x: (B, 4) f32 -> (B,) int32 action indices.

    Parameter convention: w1 (4, 32), w2 (32, 2) stored as (in, out); biases may
    be (32,)/(1,32) and (2,)/(1,2).  block_half = batch-tile width in lanes per
    packed half (default 16384 lanes = 32768 samples per grid step, ~1.3 MiB of
    double-buffered VMEM -> fine on v5e/v6e/v7x scoped-VMEM defaults).
    """
    B = x.shape[0]
    C = 256  # in-kernel lane chunk: h chunk = (64, C) f32 = 16 vregs

    # ---- normalize / fold parameters (tiny host-side ops) ----
    w1 = jnp.asarray(w1, jnp.float32)            # (4, 32)
    b1 = jnp.asarray(b1, jnp.float32).reshape(32)
    w2 = jnp.asarray(w2, jnp.float32)            # (32, 2)
    b2 = jnp.asarray(b2, jnp.float32).reshape(2)

    w1t = w1.T                                   # (32, 4)
    wd = w2[:, 1] - w2[:, 0]                     # (32,) folded layer-2 weight
    thr = (b2[0] - b2[1]).reshape(1, 1)          # score > thr  <=>  logit1 > logit0

    # block-diagonal layer-1 weight: one matmul serves both packed batch halves
    w1p = jnp.zeros((64, 8), jnp.float32)
    w1p = w1p.at[0:32, 0:4].set(w1t).at[32:64, 4:8].set(w1t)
    b1p = jnp.concatenate([b1, b1]).reshape(64, 1)
    # folded layer-2 weight, one row per batch half (rows 2..7 are zero padding)
    w2p = jnp.zeros((8, 64), jnp.float32)
    w2p = w2p.at[0, 0:32].set(wd).at[1, 32:64].set(wd)

    # ---- batch tiling: two halves packed into sublanes, lane-major batch ----
    block_half = max(C, (int(block_half) // C) * C)
    half = pl.cdiv(pl.cdiv(B, 2), C) * C         # lanes per half (multiple of C)
    tb_half = min(block_half, half)
    if half // tb_half < 2 and half >= 8 * C:    # give v7x's 2 TCs >= 2 grid steps
        tb_half = pl.cdiv(half, 2 * C) * C
    half = pl.cdiv(half, tb_half) * tb_half      # whole number of tiles
    pad_b = 2 * half

    xpad = jnp.pad(x.astype(jnp.float32), ((0, pad_b - B), (0, 0)))   # (pad_b, 4)
    # (8, half): sublanes 0..3 = features of samples [0, half),
    #            sublanes 4..7 = features of samples [half, 2*half)
    xt8 = xpad.reshape(2, half, 4).transpose(0, 2, 1).reshape(8, half)
    # TODO(synk): callers that can supply x directly in this (8, half) layout (and
    # consume the (2, half) output) save one full HBM pass over x in the wrapper.

    out = pl.pallas_call(
        functools.partial(net_kernel, chunk=C),
        out_shape=jax.ShapeDtypeStruct((2, half), jnp.int32),
        grid_spec=pltpu.PrefetchScalarGridSpec(
            num_scalar_prefetch=0,
            grid=(half // tb_half,),
            in_specs=[
                pl.BlockSpec((8, tb_half), lambda i: (0, i)),   # x tile (pipelined)
                pl.BlockSpec((64, 8), lambda i: (0, 0)),        # weights VMEM-resident
                pl.BlockSpec((64, 1), lambda i: (0, 0)),
                pl.BlockSpec((8, 64), lambda i: (0, 0)),
                pl.BlockSpec((1, 1), lambda i: (0, 0)),
            ],
            out_specs=pl.BlockSpec((2, tb_half), lambda i: (0, i)),  # lane-dense out
        ),
        compiler_params=pltpu.CompilerParams(
            dimension_semantics=("parallel",),
        ),
    )(xt8, w1p, b1p, w2p, thr)

    # (2, half) row-major == [first-half actions, second-half actions]
    return out.reshape(-1)[:B]


def init_params(key):
    """Deterministic init mirroring nn.Linear defaults (U[-1/sqrt(fan_in), +])."""
    k1, k2, k3, k4 = jax.random.split(key, 4)
    bound1 = 1.0 / jnp.sqrt(4.0)
    bound2 = 1.0 / jnp.sqrt(32.0)
    # stored as (in_features, out_features); biases in native nn.Linear shape
    w1 = jax.random.uniform(k1, (4, 32), jnp.float32, -bound1, bound1)
    b1 = jax.random.uniform(k2, (32,), jnp.float32, -bound1, bound1)
    w2 = jax.random.uniform(k3, (32, 2), jnp.float32, -bound2, bound2)
    b2 = jax.random.uniform(k4, (2,), jnp.float32, -bound2, bound2)
    return w1, b1, w2, b2


if __name__ == "__main__":
    key = jax.random.PRNGKey(0)
    kx, kp = jax.random.split(key)

    B = 8                                    # small batch of CartPole observations
    x = jax.random.normal(kx, (B, 4), jnp.float32)
    w1, b1, w2, b2 = init_params(kp)

    actions = net_forward(x, w1, b1, w2, b2)
    actions = jax.block_until_ready(actions)

    # cross-check against a plain-JAX reference of the original module
    h = jnp.maximum(x @ w1 + b1[None, :], 0.0)
    logits = h @ w2 + b2[None, :]
    ref = jnp.argmax(jax.nn.softmax(logits, axis=1), axis=1).astype(jnp.int32)

    assert actions.shape == (B,)
    assert actions.dtype == jnp.int32
    # allow disagreement only where the two logits are equal to within fp noise
    near_tie = jnp.abs(logits[:, 1] - logits[:, 0]) <= 1e-5
    assert bool(jnp.all((actions == ref) | near_tie))

    print("KERNEL_OK")
</pallas_src>

<mosaic_0001>
module attributes {stable_mosaic.version = 11 : i64} {
  func.func @net_kernel(%arg0: i32, %arg1: memref<8x256xf32, #tpu.memory_space<vmem>>, %arg2: memref<64x8xf32, #tpu.memory_space<vmem>>, %arg3: memref<64x1xf32, #tpu.memory_space<vmem>>, %arg4: memref<8x64xf32, #tpu.memory_space<vmem>>, %arg5: memref<1x1xf32, #tpu.memory_space<vmem>>, %arg6: memref<2x256xi32, #tpu.memory_space<vmem>>) attributes {dimension_semantics = [#tpu.dimension_semantics<parallel>], iteration_bounds = array<i64: 1>, scalar_prefetch = 0 : i64, scratch_operands = 0 : i64, tpu.core_type = #tpu.core_type<tc>, window_params = [{transform_indices = @transform_0, window_bounds = array<i64: 8, 256>}, {pipeline_mode = #tpu.pipeline_mode<synchronous>, transform_indices = @transform_1, window_bounds = array<i64: 64, 8>}, {pipeline_mode = #tpu.pipeline_mode<synchronous>, transform_indices = @transform_2, window_bounds = array<i64: 64, 1>}, {pipeline_mode = #tpu.pipeline_mode<synchronous>, transform_indices = @transform_3, window_bounds = array<i64: 8, 64>}, {pipeline_mode = #tpu.pipeline_mode<synchronous>, transform_indices = @transform_4, window_bounds = array<i64: 1, 1>}, {transform_indices = @transform_5, window_bounds = array<i64: 2, 256>}]} {
    %c0 = arith.constant 0 : index
    %c0_0 = arith.constant 0 : index
    %0 = vector.load %arg2[%c0, %c0_0] : memref<64x8xf32, #tpu.memory_space<vmem>>, vector<64x8xf32>
    %c0_1 = arith.constant 0 : index
    %c0_2 = arith.constant 0 : index
    %1 = vector.load %arg3[%c0_1, %c0_2] : memref<64x1xf32, #tpu.memory_space<vmem>>, vector<64x1xf32>
    %c0_3 = arith.constant 0 : index
    %c0_4 = arith.constant 0 : index
    %2 = vector.load %arg4[%c0_3, %c0_4] : memref<8x64xf32, #tpu.memory_space<vmem>>, vector<8x64xf32>
    %c0_5 = arith.constant 0 : index
    %c0_6 = arith.constant 0 : index
    %3 = vector.load %arg5[%c0_5, %c0_6] : memref<1x1xf32, #tpu.memory_space<vmem>>, vector<1x1xf32>
    %c0_i32 = arith.constant 0 : i32
    %c1_i32 = arith.constant 1 : i32
    %4 = arith.muli %c0_i32, %c1_i32 : i32
    %c0_i32_7 = arith.constant 0 : i32
    %5 = arith.addi %c0_i32_7, %4 : i32
    %c256_i32 = arith.constant 256 : i32
    %6 = arith.muli %5, %c256_i32 : i32
    %7 = tpu.assume_multiple %6, 256 : i32
    %c0_8 = arith.constant 0 : index
    %8 = arith.index_cast %7 : i32 to index
    %9 = vector.load %arg1[%c0_8, %8] : memref<8x256xf32, #tpu.memory_space<vmem>>, vector<8x256xf32>
    %cst = arith.constant dense<0.000000e+00> : vector<64x256xf32>
    %10 = tpu.matmul %0, %9, %cst {dimension_numbers = #tpu.dot_dimension_numbers<[1], [0], [0], [1], [0, 0, 1, 1], [], []>} : vector<64x8xf32>, vector<8x256xf32>, vector<64x256xf32> -> vector<64x256xf32>
    %11 = vector.broadcast %1 : vector<64x1xf32> to vector<64x256xf32>
    %12 = arith.addf %10, %11 : vector<64x256xf32>
    %cst_9 = arith.constant 0.000000e+00 : f32
    %13 = vector.broadcast %cst_9 : f32 to vector<64x256xf32>
    %14 = arith.maximumf %12, %13 : vector<64x256xf32>
    %cst_10 = arith.constant dense<0.000000e+00> : vector<8x256xf32>
    %15 = tpu.matmul %2, %14, %cst_10 {dimension_numbers = #tpu.dot_dimension_numbers<[1], [0], [0], [1], [0, 0, 1, 1], [], []>} : vector<8x64xf32>, vector<64x256xf32>, vector<8x256xf32> -> vector<8x256xf32>
    %16 = vector.extract_strided_slice %15 {offsets = [0, 0], sizes = [2, 256], strides = [1, 1]} : vector<8x256xf32> to vector<2x256xf32>
    %17 = vector.broadcast %3 : vector<1x1xf32> to vector<2x256xf32>
    %18 = arith.cmpf ogt, %16, %17 : vector<2x256xf32>
    %19 = arith.extui %18 : vector<2x256xi1> to vector<2x256xi32>
    %c0_11 = arith.constant 0 : index
    %20 = arith.index_cast %7 : i32 to index
    %21 = vector.load %arg6[%c0_11, %20] : memref<2x256xi32, #tpu.memory_space<vmem>>, vector<2x256xi32>
    tpu.vector_store %arg6[%c0_11, %20], %19 {strides = array<i32>} : memref<2x256xi32, #tpu.memory_space<vmem>>, vector<2x256xi32>,
    %c1_i32_12 = arith.constant 1 : i32
    return
  }
  func.func @transform_0(%arg0: i32) -> (i32, i32) {
    %c0_i32 = arith.constant 0 : i32
    %c0_i32_0 = arith.constant 0 : i32
    return %c0_i32, %arg0 : i32, i32
  }
  func.func @transform_1(%arg0: i32) -> (i32, i32) {
    %c0_i32 = arith.constant 0 : i32
    %c0_i32_0 = arith.constant 0 : i32
    %c0_i32_1 = arith.constant 0 : i32
    return %c0_i32, %c0_i32_0 : i32, i32
  }
  func.func @transform_2(%arg0: i32) -> (i32, i32) {
    %c0_i32 = arith.constant 0 : i32
    %c0_i32_0 = arith.constant 0 : i32
    %c0_i32_1 = arith.constant 0 : i32
    return %c0_i32, %c0_i32_0 : i32, i32
  }
  func.func @transform_3(%arg0: i32) -> (i32, i32) {
    %c0_i32 = arith.constant 0 : i32
    %c0_i32_0 = arith.constant 0 : i32
    %c0_i32_1 = arith.constant 0 : i32
    return %c0_i32, %c0_i32_0 : i32, i32
  }
  func.func @transform_4(%arg0: i32) -> (i32, i32) {
    %c0_i32 = arith.constant 0 : i32
    %c0_i32_0 = arith.constant 0 : i32
    %c0_i32_1 = arith.constant 0 : i32
    return %c0_i32, %c0_i32_0 : i32, i32
  }
  func.func @transform_5(%arg0: i32) -> (i32, i32) {
    %c0_i32 = arith.constant 0 : i32
    %c0_i32_0 = arith.constant 0 : i32
    return %c0_i32, %arg0 : i32, i32
  }
}

</mosaic_0001>

<bundles_post_ra>
// kernel: net_forward.1
= control target key start
LH: loop header
LB: loop body
LE: loop exit
PB: predicated region body
PF: predicated region fallthrough
CT: control target
= control target key end

     0   :  { %v292_v0 = vmov 0   ;;  %vm82_vm0 = vcmask 64512   ;;  %vm205_vm1 = vcmask 523264   ;;  %vm260_vm4 = vcmask 1041408   ;;  %s407_s2 = inlined_call_operand.vmem [shape: f32[64,1], index: 2, kind: input, shape index: {}]   ;;  %s408_s0 = inlined_call_operand.vmem [shape: f32[8,256], index: 0, kind: input, shape index: {}]   ;;  %s409_s1 = inlined_call_operand.vmem [shape: f32[64,8], index: 1, kind: input, shape index: {}]   ;;  %s410_s4 = inlined_call_operand.<no memory space> [shape: f32[1,1], index: 4, kind: input, shape index: {}]   ;;  %s411_s3 = inlined_call_operand.vmem [shape: f32[8,64], index: 3, kind: input, shape index: {}]   ;;  %s412_s5 = inlined_call_operand.vmem [shape: s32[2,256], index: 5, kind: output, shape index: {}]  }
   0x1   :  { %289 = vset.pattern.permute.xlu1 %v292_v0  ;;  %v35_v1 = vld [vmem:[%s407_s2 + $0x28] sm:$0xff]  ;;  %v40_v2 = vld [vmem:[%s408_s0] sm:$0xff]  ;;  %288 = vset.pattern.permute.xlu0 %v292_v0  ;;  %v37_v6 = vld [vmem:[%s407_s2 + $0x38] sm:$0xff]  ;;  %v10_v7 = vstv %s410_s4 }
   0x2   :  { %v41_v3 = vld [vmem:[%s408_s0 + $0x8] sm:$0xff]  ;;  %69 = vperm.xlu1 %289, %v35_v1   ;;  %122 = vmatpush.msra.mxu0 %v40_v2  ;;  %v22_v4 = vld [vmem:[%s409_s1] sm:$0xff]  ;;  %v33_v8 = vld [vmem:[%s407_s2 + $0x18] sm:$0xff]  ;;  %11 = vst [vmem:[#allocation2] sm:$0x1] %v10_v7 }
   0x3   :  { %v27_v5 = vld [vmem:[%s409_s1 + $0x28] sm:$0xff]  ;;  %285 = vmatpush.msra.mxu2 %v40_v2  ;;  %163 = vmatpush.msra.mxu1 %v41_v3  ;;  %v34_v9 = vld [vmem:[%s407_s2 + $0x20] sm:$0xff]  ;;  %v28_v11 = vld [vmem:[%s409_s1 + $0x30] sm:$0xff] }
   0x4   :  { %286 = vmatpush.msra.mxu3 %v41_v3  ;;  %267 = vmatmul.msk.f32.vlgmr.msra.gmra.mxu0 %vm82_vm0, %v22_v4  ;;  %v23_v10 = vld [vmem:[%s409_s1 + $0x8] sm:$0xff]  ;;  %v36_v12 = vld [vmem:[%s407_s2 + $0x30] sm:$0xff]  ;;  %v30_v14 = vld [vmem:[%s407_s2] sm:$0xff] }
   0x5   :  { %272 = vmatmul.msk.f32.vlgmr.msra.gmra.mxu2 %vm82_vm0, %v27_v5  ;;  %275 = vmatmul.msk.f32.vlgmr.msra.gmra.mxu1 %vm82_vm0, %v22_v4  ;;  %v32_v13 = vld [vmem:[%s407_s2 + $0x10] sm:$0xff]  ;;  %v29_v16 = vld [vmem:[%s409_s1 + $0x38] sm:$0xff]  ;;  %v31_v17 = vld [vmem:[%s407_s2 + $0x8] sm:$0xff] }
   0x6   :  { %280 = vmatmul.msk.f32.vlgmr.msra.gmra.mxu3 %vm82_vm0, %v27_v5  ;;  %79 = vperm.xlu0 %288, %v37_v6   ;;  %v24_v15 = vld [vmem:[%s409_s1 + $0x10] sm:$0xff]  ;;  %v25_v19 = vld [vmem:[%s409_s1 + $0x18] sm:$0xff]  ;;  %v26_v20 = vld [vmem:[%s409_s1 + $0x20] sm:$0xff] }
   0x7   :  { %290 = vset.pattern.permute.xlu2 %v292_v0 }
   0x8   :  { %59 = vperm.xlu2 %290, %v33_v8  }
   0x9   :  { %v291_v18 = vld [vmem:[#allocation2] ss:$0 sm:$0xff] }
   0xa   :  { %64 = vperm.xlu1 %289, %v34_v9  }
   0xc   :  { %268 = vmatmul.msk.f32.gmra.mxu0 %vm82_vm0, %v23_v10 }
   0xd   :  { %273 = vmatmul.msk.f32.gmra.mxu2 %vm82_vm0, %v28_v11  ;;  %276 = vmatmul.msk.f32.gmra.mxu1 %vm82_vm0, %v23_v10 }
   0xe   :  { %281 = vmatmul.msk.f32.gmra.mxu3 %vm82_vm0, %v28_v11  ;;  %74 = vperm.xlu0 %288, %v36_v12  }
  0x10   :  { %54 = vperm.xlu2 %290, %v32_v13   ;;  %v38_v13 = vld [vmem:[%s411_s3] sm:$0xff] }
  0x12   :  { %44 = vperm.xlu1 %289, %v30_v14  }
  0x14   :  { %269 = vmatmul.msk.f32.gmra.mxu0 %vm82_vm0, %v24_v15 }
  0x15   :  { %274 = vmatmul.msk.f32.gmra.mxu2 %vm82_vm0, %v29_v16  ;;  %277 = vmatmul.msk.f32.gmra.mxu1 %vm82_vm0, %v24_v15 }
  0x16   :  { %282 = vmatmul.msk.f32.gmra.mxu3 %vm82_vm0, %v29_v16  ;;  %49 = vperm.xlu0 %288, %v31_v17  }
  0x18   :  { %252 = vperm.xlu2 %290, %v291_v18  }
  0x1c   :  { %270 = vmatmul.msk.f32.gmra.mxu0 %vm82_vm0, %v25_v19 }
  0x1d   :  { %278 = vmatmul.msk.f32.gmra.mxu1 %vm82_vm0, %v25_v19 }
  0x24   :  { %271 = vmatmul.msk.f32.gmra.mxu0 %vm82_vm0, %v26_v20 }
  0x25   :  { %279 = vmatmul.msk.f32.gmra.mxu1 %vm82_vm0, %v26_v20 }
  0x62   :  { %v60_v33 = vpop.permute.xlu2 %59 }
  0x6a   :  { %v55_v53 = vpop.permute.xlu2 %54 }
  0x72   :  { %v253_v16 = vpop.permute.xlu2 %252 }
  0x74   :  { %v70_v28 = vpop.permute.xlu1 %69 }
  0x78   :  { %v80_v27 = vpop.permute.xlu0 %79 }
  0x7c   :  { %v65_v43 = vpop.permute.xlu1 %64 }
  0x80   :  { %v75_v34 = vpop.permute.xlu0 %74 }
  0x81   :  { %v124_v21 = vpop.f32.mrf.mxu0 }
  0x82   :  { %v165_v22 = vpop.f32.mrf.mxu1 }
  0x84   :  { %v45_v62 = vpop.permute.xlu1 %44 }
  0x85   :  { %v125_v6 = vadd.f32 %v124_v21, %v45_v62  ;;  %v166_v8 = vadd.f32 %v165_v22, %v45_v62 }
  0x87   :  { %v189_v12 = vmax.f32 %v125_v6, 0.0  ;;  %v190_v14 = vmax.f32 %v166_v8, 0.0 }
  0x88   :  { %v139_v23 = vpop.f32.mrf.mxu2  ;;  %v50_v59 = vpop.permute.xlu0 %49 }
  0x89   :  { %v180_v24 = vpop.f32.mrf.mxu3  ;;  %v127_v25 = vpop.f32.mrf.mxu0  ;;  %v140_v44 = vadd.f32 %v139_v23, %v70_v28 }
  0x8a   :  { %v168_v26 = vpop.f32.mrf.mxu1  ;;  %v181_v46 = vadd.f32 %v180_v24, %v70_v28  ;;  %v128_v2 = vadd.f32 %v127_v25, %v50_v59 }
  0x8b   :  { %v199_v50 = vmax.f32 %v140_v44, 0.0  ;;  %v169_v4 = vadd.f32 %v168_v26, %v50_v59 }
  0x8c   :  { %v200_v51 = vmax.f32 %v181_v46, 0.0  ;;  %v191_v10 = vmax.f32 %v128_v2, 0.0 }
  0x8d   :  { %v192_v11 = vmax.f32 %v169_v4, 0.0 }
  0x90   :  { %v142_v29 = vpop.f32.mrf.mxu2 }
  0x91   :  { %v183_v30 = vpop.f32.mrf.mxu3  ;;  %v130_v31 = vpop.f32.mrf.mxu0  ;;  %v143_v36 = vadd.f32 %v142_v29, %v75_v34 }
  0x92   :  { %v171_v32 = vpop.f32.mrf.mxu1  ;;  %v184_v40 = vadd.f32 %v183_v30, %v75_v34  ;;  %v131_v60 = vadd.f32 %v130_v31, %v55_v53 }
  0x93   :  { %v201_v48 = vmax.f32 %v143_v36, 0.0  ;;  %v172_v63 = vadd.f32 %v171_v32, %v55_v53 }
  0x94   :  { %v202_v49 = vmax.f32 %v184_v40, 0.0  ;;  %v193_v7 = vmax.f32 %v131_v60, 0.0 }
  0x95   :  { %v194_v9 = vmax.f32 %v172_v63, 0.0 }
  0x98   :  { %v145_v35 = vpop.f32.mrf.mxu2 }
  0x99   :  { %v146_v37 = vadd.f32 %v145_v35, %v80_v27  ;;  %v186_v38 = vpop.f32.mrf.mxu3  ;;  %v133_v39 = vpop.f32.mrf.mxu0 }
  0x9a   :  { %v187_v41 = vadd.f32 %v186_v38, %v80_v27  ;;  %v174_v42 = vpop.f32.mrf.mxu1  ;;  %v134_v54 = vadd.f32 %v133_v39, %v60_v33 }
  0x9b   :  { %v203_v45 = vmax.f32 %v146_v37, 0.0  ;;  %v175_v57 = vadd.f32 %v174_v42, %v60_v33 }
  0x9c   :  { %v204_v47 = vmax.f32 %v187_v41, 0.0  ;;  %v195_v3 = vmax.f32 %v134_v54, 0.0 }
  0x9d   :  { %217 = vmatpush.msrb.mxu2 %v203_v45  ;;  %v196_v5 = vmax.f32 %v175_v57, 0.0 }
  0x9e   :  { %237 = vmatpush.msrb.mxu3 %v204_v47 }
  0x9f   :  { %218 = vmatpush.msrb.mxu2 %v201_v48 }
  0xa0   :  { %238 = vmatpush.msrb.mxu3 %v202_v49 }
  0xa1   :  { %219 = vmatpush.msrb.mxu2 %v199_v50  ;;  %v136_v52 = vpop.f32.mrf.mxu0 }
  0xa2   :  { %239 = vmatpush.msrb.mxu3 %v200_v51  ;;  %v137_v55 = vadd.f32 %v136_v52, %v65_v43  ;;  %v177_v56 = vpop.f32.mrf.mxu1 }
  0xa3   :  { %v178_v58 = vadd.f32 %v177_v56, %v65_v43 }
  0xa4   :  { %v197_v61 = vmax.f32 %v137_v55, 0.0 }
  0xa5   :  { %v198_v1 = vmax.f32 %v178_v58, 0.0 }
  0xa6   :  { %220 = vmatpush.msrb.mxu2 %v197_v61 }
  0xa7   :  { %240 = vmatpush.msrb.mxu3 %v198_v1 }
  0xa8   :  { %221 = vmatpush.msrb.mxu2 %v195_v3 }
  0xa9   :  { %241 = vmatpush.msrb.mxu3 %v196_v5 }
  0xaa   :  { %222 = vmatpush.msrb.mxu2 %v193_v7 }
  0xab   :  { %242 = vmatpush.msrb.mxu3 %v194_v9 }
  0xac   :  { %223 = vmatpush.msrb.mxu2 %v191_v10 }
  0xad   :  { %243 = vmatpush.msrb.mxu3 %v192_v11 }
  0xae   :  { %224 = vmatpush.msrb.mxu2 %v189_v12 }
  0xaf   :  { %244 = vmatpush.msrb.mxu3 %v190_v14  ;;  %283 = vmatmul.msk.f32.vlgmr.msrb.gmra.mxu2 %vm205_vm1, %v38_v13 }
  0xb0   :  { %284 = vmatmul.msk.f32.vlgmr.msrb.gmra.mxu3 %vm205_vm1, %v38_v13 }
 0x132   :  { %v226_v15 = vpop.f32.mrf.mxu2 }
 0x133   :  { %v246_v17 = vpop.f32.mrf.mxu3  ;;  %vm255_vm2 = vcmp.gt.f32.partialorder %v226_v15, %v253_v16 }
 0x134   :  { %vm256_vm3 = vcmp.gt.f32.partialorder %v246_v17, %v253_v16  ;;  %v257_v20 = vsel %vm255_vm2, 1, %v292_v0 }
 0x135   :  { %v258_v18 = vsel %vm256_vm3, 1, %v292_v0 }
 0x136   :  { %v259_v19 = vrot.slane %v258_v18, 6 }
 0x138   :  { %v261_v21 = vsel %vm260_vm4, %v257_v20, %v259_v19 }
 0x139   :  { %262 = vst [vmem:[%s412_s5] sm:$0xf] %v261_v21 }

</bundles_post_ra>
